<compile_context>
chip_gen: v6e
topology: v6e:2x2x1
jax: 0.10.0
libtpu: 0.0.40
codegen_flags: <defaults>
</compile_context>

<pallas_src>
import functools

import jax
import jax.numpy as jnp
from jax.experimental import pallas as pl
from jax.experimental.pallas import tpu as pltpu


def _mmd_ce_kernel(tgt_ref, preds_ref, w_ref, wt_ref, out_ref, *,
                   n, m, mmd_coef, median_iters):
    f32 = jnp.float32
    N = n + m

    # ---- z = concat([row_normalize(w), wt]) and its pairwise sq-distances ----
    w = w_ref[...]                                              # [n, d]
    wt = wt_ref[...]                                            # [m, d]
    inv_norm = jax.lax.rsqrt(jnp.sum(w * w, axis=-1, keepdims=True))
    z = jnp.concatenate([w * inv_norm, wt], axis=0)             # [N, d]
    d = z.shape[-1]

    # Gram matrix via a last-axis contraction (no in-kernel .T; MXU, f32 acc).
    g = jax.lax.dot_general(z, z, (((1,), (1,)), ((), ())),
                            preferred_element_type=f32)         # [N, N]
    zsq = z * z
    sq_col = jnp.sum(zsq, axis=-1, keepdims=True)               # [N, 1]
    ones_row = jnp.ones((1, d), f32)
    sq_row = jax.lax.dot_general(ones_row, zsq, (((1,), (1,)), ((), ())),
                                 preferred_element_type=f32)    # [1, N]

    row = jax.lax.broadcasted_iota(jnp.int32, (N, N), 0)
    col = jax.lax.broadcasted_iota(jnp.int32, (N, N), 1)
    d2 = jnp.maximum(sq_col + sq_row - 2.0 * g, 0.0)
    d2 = jnp.where(row == col, 0.0, d2)      # exact 0 diagonal -> exp(0) == 1

    def _sum2d(a):                           # full reduction kept as a [1, 1] tile
        return jnp.sum(jnp.sum(a, axis=1, keepdims=True), axis=0, keepdims=True)

    # ---- sigma: lower-median of pdist(z) via bisection / counting selection ----
    # pdist == strict upper triangle; sqrt is monotone, so select on d2 and take
    # a single scalar sqrt at the end.  torch.median returns the lower median,
    # i.e. 0-based rank (P-1)//2 of the P = N(N-1)/2 sorted pairwise values.
    upper = col > row
    num_pairs = N * (N - 1) // 2
    rank = (num_pairs - 1) // 2
    # f32 counting is exact for num_pairs < 2**24 (N < ~5800).
    need = jnp.full((1, 1), float(rank) + 0.5, f32)

    hi0 = jnp.max(jnp.max(jnp.where(upper, d2, 0.0), axis=1, keepdims=True),
                  axis=0, keepdims=True)                         # [1, 1]
    lo0 = jnp.zeros((1, 1), f32)

    def _bisect(_, carry):
        lo, hi = carry
        mid = 0.5 * (lo + hi)
        cnt = _sum2d(jnp.where(upper & (d2 <= mid), 1.0, 0.0))
        go_hi = cnt > need                   # at least rank+1 values are <= mid
        return jnp.where(go_hi, lo, mid), jnp.where(go_hi, mid, hi)

    _, med_d2 = jax.lax.fori_loop(0, median_iters, _bisect, (lo0, hi0))
    sigma = 0.5 * jnp.sqrt(med_d2)                               # [1, 1]

    # ---- RBF-kernel MMD (block sums via symmetry, 2 masked selects) ----
    coef = -1.0 / (2.0 * sigma * sigma)
    kmat = jnp.exp(d2 * coef)                                    # [N, N]

    in_x_r = row < n
    in_x_c = col < n
    s_total = _sum2d(kmat)
    s_xrows = _sum2d(jnp.where(in_x_r, kmat, 0.0))
    s_xx = _sum2d(jnp.where(in_x_r & in_x_c, kmat, 0.0))
    s_xy = s_xrows - s_xx
    s_yy = s_total - 2.0 * s_xrows + s_xx
    # eye(N) * 1e-5 only touches the diagonal, i.e. the xx and yy blocks.
    s_xx = s_xx + n * 1e-5
    s_yy = s_yy + m * 1e-5

    mmd_loss = mmd_coef * (s_xx * (1.0 / (n * (n - 1)))
                           + s_yy * (1.0 / (m * (m - 1)))
                           - s_xy * (2.0 / (n * m)))             # [1, 1]

    # ---- cross entropy (mean reduction, integer targets read from SMEM) ----
    preds = preds_ref[...]                                       # [B, C]
    B, C = preds.shape
    mx = jnp.max(preds, axis=-1, keepdims=True)
    lse = mx + jnp.log(jnp.sum(jnp.exp(preds - mx), axis=-1, keepdims=True))
    prow = jax.lax.broadcasted_iota(jnp.int32, (B, C), 0)
    pcls = jax.lax.broadcasted_iota(jnp.int32, (B, C), 1)
    onehot = jnp.zeros((B, C), f32)
    # TODO(synk): static unroll of SMEM scalar reads is fine for small B; for
    # large batches keep targets as a (B, 1) VMEM block and build the one-hot
    # with a single vector compare instead.
    for b in range(B):
        onehot = jnp.where((prow == b) & (pcls == tgt_ref[b]), 1.0, onehot)
    ce = (_sum2d(lse) - _sum2d(onehot * preds)) * (1.0 / B)      # [1, 1]

    # ---- pack (total, ce, mmd) into one lane-dense row -> single store ----
    lane = jax.lax.broadcasted_iota(jnp.int32, (1, out_ref.shape[-1]), 1)
    total = ce + mmd_loss
    packed = jnp.where(lane == 0, total,
                       jnp.where(lane == 1, ce,
                                 jnp.where(lane == 2, mmd_loss, 0.0)))
    out_ref[...] = packed.astype(out_ref.dtype)


def mmd_criterion_forward(preds, tgts, weights, weights_tgt, mmd_coef=100.0,
                          median_iters=40):
    """Pallas implementation of MMDCriterion.forward.

    Args:
      preds:       [B, C] f32 logits
      tgts:        [B]    int class indices
      weights:     [n, d] f32 (row-normalized inside)
      weights_tgt: [m, d] f32 (assumed already normalized, as in the spec)
    Returns:
      (total_loss, cross_entropy_loss, mmd_loss) as f32 scalars.
    """
    n, d = weights.shape
    m, d_t = weights_tgt.shape
    assert d == d_t
    assert n > 1 and m > 1, "mmd divides by n(n-1) and m(m-1)"
    B, C = preds.shape
    N = n + m

    kernel = functools.partial(_mmd_ce_kernel, n=n, m=m,
                               mmd_coef=float(mmd_coef),
                               median_iters=int(median_iters))

    cost = pl.CostEstimate(
        flops=int(2 * N * N * d + (10 + 3 * median_iters) * N * N + 8 * B * C),
        transcendentals=int(N * N + B * C),
        bytes_accessed=int(4 * (n * d + m * d + B * C + B + 128)),
    )

    out = pl.pallas_call(
        kernel,
        out_shape=jax.ShapeDtypeStruct((1, 128), jnp.float32),
        grid_spec=pltpu.PrefetchScalarGridSpec(
            num_scalar_prefetch=0,
            grid=(1,),
            in_specs=[
                pl.BlockSpec(memory_space=pltpu.MemorySpace.SMEM),   # tgts (B,)
                pl.BlockSpec((B, C), lambda i: (0, 0)),              # preds
                pl.BlockSpec((n, d), lambda i: (0, 0)),              # weights
                pl.BlockSpec((m, d), lambda i: (0, 0)),              # weights_tgt
            ],
            out_specs=pl.BlockSpec((1, 128), lambda i: (0, 0)),
        ),
        compiler_params=pltpu.CompilerParams(dimension_semantics=("arbitrary",)),
        cost_estimate=cost,
    )(tgts.astype(jnp.int32), preds.astype(jnp.float32),
      weights.astype(jnp.float32), weights_tgt.astype(jnp.float32))

    return out[0, 0], out[0, 1], out[0, 2]


if __name__ == "__main__":
    B, C = 8, 8          # batch / num classes for the CE term
    n, m, d = 8, 16, 32  # source rows, target rows, embedding dim

    key = jax.random.PRNGKey(0)
    kp, kt, kw, kwt = jax.random.split(key, 4)
    preds = jax.random.normal(kp, (B, C), dtype=jnp.float32)
    tgts = jax.random.randint(kt, (B,), 0, C, dtype=jnp.int32)
    weights = jax.random.normal(kw, (n, d), dtype=jnp.float32)
    wt_raw = jax.random.normal(kwt, (m, d), dtype=jnp.float32)
    weights_tgt = wt_raw / jnp.linalg.norm(wt_raw, axis=-1, keepdims=True)  # "already normalized"

    total, ce, mmd_loss = mmd_criterion_forward(preds, tgts, weights, weights_tgt,
                                                mmd_coef=100.0)
    jax.block_until_ready((total, ce, mmd_loss))

    # ---- plain-JAX reference with the same semantics as the torch module ----
    wn = weights / jnp.linalg.norm(weights, axis=-1, keepdims=True)
    z = jnp.concatenate([wn, weights_tgt], axis=0)
    diff = z[:, None, :] - z[None, :, :]
    dmat = jnp.sqrt(jnp.maximum(jnp.sum(diff * diff, axis=-1), 0.0))
    N = n + m
    iu = jnp.triu_indices(N, k=1)
    pd_ref = dmat[iu]
    sigma_r = jnp.sort(pd_ref)[(pd_ref.shape[0] - 1) // 2] / 2.0
    kmat = jnp.exp(-1.0 / (2.0 * sigma_r ** 2) * dmat ** 2) + jnp.eye(N) * 1e-5
    mmd_r = (kmat[:n, :n].sum() / (n * (n - 1))
             + kmat[n:, n:].sum() / (m * (m - 1))
             - 2.0 * kmat[:n, n:].sum() / (n * m))
    mmd_loss_r = 100.0 * mmd_r
    lse_r = jax.nn.logsumexp(preds, axis=-1)
    ce_r = jnp.mean(lse_r - preds[jnp.arange(B), tgts])
    total_r = ce_r + mmd_loss_r

    assert jnp.allclose(ce, ce_r, atol=1e-4, rtol=1e-4), (ce, ce_r)
    assert jnp.allclose(mmd_loss, mmd_loss_r, atol=1e-3, rtol=1e-3), (mmd_loss, mmd_loss_r)
    assert jnp.allclose(total, total_r, atol=1e-3, rtol=1e-3), (total, total_r)
    print("KERNEL_OK")
</pallas_src>

<mosaic_0001>
module attributes {stable_mosaic.version = 11 : i64} {
  func.func @_mmd_ce_kernel(%arg0: i32, %arg1: memref<8xi32, #tpu.memory_space<smem>>, %arg2: memref<8x8xf32, #tpu.memory_space<vmem>>, %arg3: memref<8x32xf32, #tpu.memory_space<vmem>>, %arg4: memref<16x32xf32, #tpu.memory_space<vmem>>, %arg5: memref<1x128xf32, #tpu.memory_space<vmem>>) attributes {dimension_semantics = [#tpu.dimension_semantics<arbitrary>], iteration_bounds = array<i64: 1>, scalar_prefetch = 0 : i64, scratch_operands = 0 : i64, tpu.core_type = #tpu.core_type<tc>, window_params = [{transform_indices = @transform_0, window_bounds = array<i64: 8>}, {pipeline_mode = #tpu.pipeline_mode<synchronous>, transform_indices = @transform_1, window_bounds = array<i64: 8, 8>}, {pipeline_mode = #tpu.pipeline_mode<synchronous>, transform_indices = @transform_2, window_bounds = array<i64: 8, 32>}, {pipeline_mode = #tpu.pipeline_mode<synchronous>, transform_indices = @transform_3, window_bounds = array<i64: 16, 32>}, {pipeline_mode = #tpu.pipeline_mode<synchronous>, transform_indices = @transform_4, window_bounds = array<i64: 1, 128>}]} {
    %c0 = arith.constant 0 : index
    %c0_0 = arith.constant 0 : index
    %0 = vector.load %arg3[%c0, %c0_0] : memref<8x32xf32, #tpu.memory_space<vmem>>, vector<8x32xf32>
    %c0_1 = arith.constant 0 : index
    %c0_2 = arith.constant 0 : index
    %1 = vector.load %arg4[%c0_1, %c0_2] : memref<16x32xf32, #tpu.memory_space<vmem>>, vector<16x32xf32>
    %2 = arith.mulf %0, %0 : vector<8x32xf32>
    %cst = arith.constant dense<0.000000e+00> : vector<8xf32>
    %3 = vector.multi_reduction <add>, %2, %cst [1] : vector<8x32xf32> to vector<8xf32>
    %4 = vector.shape_cast %3 : vector<8xf32> to vector<8x1xf32>
    %5 = math.rsqrt %4 : vector<8x1xf32>
    %6 = vector.broadcast %5 : vector<8x1xf32> to vector<8x32xf32>
    %7 = arith.mulf %0, %6 : vector<8x32xf32>
    %8 = tpu.concatenate %7, %1 in 0 : vector<8x32xf32>, vector<16x32xf32> -> vector<24x32xf32>
    %cst_3 = arith.constant dense<0.000000e+00> : vector<24x24xf32>
    %9 = tpu.matmul %8, %8, %cst_3 {dimension_numbers = #tpu.dot_dimension_numbers<[1], [1], [0], [0], [0, 0, 1, 0], [], []>} : vector<24x32xf32>, vector<24x32xf32>, vector<24x24xf32> -> vector<24x24xf32>
    %10 = arith.mulf %8, %8 : vector<24x32xf32>
    %cst_4 = arith.constant dense<0.000000e+00> : vector<24xf32>
    %11 = vector.multi_reduction <add>, %10, %cst_4 [1] : vector<24x32xf32> to vector<24xf32>
    %12 = vector.shape_cast %11 : vector<24xf32> to vector<24x1xf32>
    %cst_5 = arith.constant 1.000000e+00 : f32
    %13 = vector.broadcast %cst_5 : f32 to vector<1x32xf32>
    %cst_6 = arith.constant dense<0.000000e+00> : vector<1x24xf32>
    %14 = tpu.matmul %13, %10, %cst_6 {dimension_numbers = #tpu.dot_dimension_numbers<[1], [1], [0], [0], [0, 0, 1, 0], [], []>} : vector<1x32xf32>, vector<24x32xf32>, vector<1x24xf32> -> vector<1x24xf32>
    %15 = tpu.iota {dimensions = array<i32: 0>} : vector<24x24xi32>
    %16 = tpu.iota {dimensions = array<i32: 1>} : vector<24x24xi32>
    %17 = vector.broadcast %12 : vector<24x1xf32> to vector<24x24xf32>
    %18 = vector.broadcast %14 : vector<1x24xf32> to vector<24x24xf32>
    %19 = arith.addf %17, %18 : vector<24x24xf32>
    %cst_7 = arith.constant 2.000000e+00 : f32
    %20 = vector.broadcast %cst_7 : f32 to vector<24x24xf32>
    %21 = arith.mulf %20, %9 : vector<24x24xf32>
    %22 = arith.subf %19, %21 : vector<24x24xf32>
    %cst_8 = arith.constant 0.000000e+00 : f32
    %23 = vector.broadcast %cst_8 : f32 to vector<24x24xf32>
    %24 = arith.maximumf %22, %23 : vector<24x24xf32>
    %25 = arith.cmpi eq, %15, %16 : vector<24x24xi32>
    %cst_9 = arith.constant 0.000000e+00 : f32
    %26 = vector.broadcast %cst_9 : f32 to vector<24x24xf32>
    %27 = arith.select %25, %26, %24 : vector<24x24xi1>, vector<24x24xf32>
    %28 = arith.cmpi sgt, %16, %15 : vector<24x24xi32>
    %cst_10 = arith.constant 1.375000e+02 : f32
    %29 = vector.broadcast %cst_10 : f32 to vector<1x1xf32>
    %cst_11 = arith.constant 0.000000e+00 : f32
    %30 = vector.broadcast %cst_11 : f32 to vector<24x24xf32>
    %31 = arith.select %28, %27, %30 : vector<24x24xi1>, vector<24x24xf32>
    %cst_12 = arith.constant dense<0xFF800000> : vector<24xf32>
    %32 = vector.multi_reduction <maximumf>, %31, %cst_12 [1] : vector<24x24xf32> to vector<24xf32>
    %33 = vector.shape_cast %32 : vector<24xf32> to vector<24x1xf32>
    %cst_13 = arith.constant dense<0xFF800000> : vector<1xf32>
    %34 = vector.multi_reduction <maximumf>, %33, %cst_13 [0] : vector<24x1xf32> to vector<1xf32>
    %35 = vector.shape_cast %34 : vector<1xf32> to vector<1x1xf32>
    %cst_14 = arith.constant 0.000000e+00 : f32
    %36 = vector.broadcast %cst_14 : f32 to vector<1x1xf32>
    %c0_i32 = arith.constant 0 : i32
    %c40_i32 = arith.constant 40 : i32
    %37 = arith.addi %c0_i32, %c40_i32 : i32
    %c1_i32 = arith.constant 1 : i32
    %38:2 = scf.for %arg6 = %c0_i32 to %37 step %c1_i32 iter_args(%arg7 = %36, %arg8 = %35) -> (vector<1x1xf32>, vector<1x1xf32>)  : i32 {
      %198 = arith.addf %arg7, %arg8 : vector<1x1xf32>
      %cst_61 = arith.constant 5.000000e-01 : f32
      %199 = vector.broadcast %cst_61 : f32 to vector<1x1xf32>
      %200 = arith.mulf %199, %198 : vector<1x1xf32>
      %201 = vector.broadcast %200 : vector<1x1xf32> to vector<24x24xf32>
      %202 = arith.cmpf ole, %27, %201 : vector<24x24xf32>
      %203 = arith.andi %28, %202 : vector<24x24xi1>
      %cst_62 = arith.constant 1.000000e+00 : f32
      %cst_63 = arith.constant 0.000000e+00 : f32
      %204 = vector.broadcast %cst_62 : f32 to vector<24x24xf32>
      %205 = vector.broadcast %cst_63 : f32 to vector<24x24xf32>
      %206 = arith.select %203, %204, %205 : vector<24x24xi1>, vector<24x24xf32>
      %cst_64 = arith.constant dense<0.000000e+00> : vector<24xf32>
      %207 = vector.multi_reduction <add>, %206, %cst_64 [1] : vector<24x24xf32> to vector<24xf32>
      %208 = vector.shape_cast %207 : vector<24xf32> to vector<24x1xf32>
      %cst_65 = arith.constant dense<0.000000e+00> : vector<1xf32>
      %209 = vector.multi_reduction <add>, %208, %cst_65 [0] : vector<24x1xf32> to vector<1xf32>
      %210 = vector.shape_cast %209 : vector<1xf32> to vector<1x1xf32>
      %211 = arith.cmpf ogt, %210, %29 : vector<1x1xf32>
      %212 = arith.select %211, %arg7, %200 : vector<1x1xi1>, vector<1x1xf32>
      %213 = arith.select %211, %200, %arg8 : vector<1x1xi1>, vector<1x1xf32>
      scf.yield %212, %213 : vector<1x1xf32>, vector<1x1xf32>
    }
    %39 = math.sqrt %38#1 : vector<1x1xf32>
    %cst_15 = arith.constant 5.000000e-01 : f32
    %40 = vector.broadcast %cst_15 : f32 to vector<1x1xf32>
    %41 = arith.mulf %40, %39 : vector<1x1xf32>
    %cst_16 = arith.constant 2.000000e+00 : f32
    %42 = vector.broadcast %cst_16 : f32 to vector<1x1xf32>
    %43 = arith.mulf %42, %41 : vector<1x1xf32>
    %44 = arith.mulf %43, %41 : vector<1x1xf32>
    %cst_17 = arith.constant -1.000000e+00 : f32
    %45 = vector.broadcast %cst_17 : f32 to vector<1x1xf32>
    %46 = arith.divf %45, %44 : vector<1x1xf32>
    %47 = vector.broadcast %46 : vector<1x1xf32> to vector<24x24xf32>
    %48 = arith.mulf %27, %47 : vector<24x24xf32>
    %49 = math.exp %48 : vector<24x24xf32>
    %c8_i32 = arith.constant 8 : i32
    %50 = vector.broadcast %c8_i32 : i32 to vector<24x24xi32>
    %51 = arith.cmpi slt, %15, %50 : vector<24x24xi32>
    %c8_i32_18 = arith.constant 8 : i32
    %52 = vector.broadcast %c8_i32_18 : i32 to vector<24x24xi32>
    %53 = arith.cmpi slt, %16, %52 : vector<24x24xi32>
    %cst_19 = arith.constant dense<0.000000e+00> : vector<24xf32>
    %54 = vector.multi_reduction <add>, %49, %cst_19 [1] : vector<24x24xf32> to vector<24xf32>
    %55 = vector.shape_cast %54 : vector<24xf32> to vector<24x1xf32>
    %cst_20 = arith.constant dense<0.000000e+00> : vector<1xf32>
    %56 = vector.multi_reduction <add>, %55, %cst_20 [0] : vector<24x1xf32> to vector<1xf32>
    %57 = vector.shape_cast %56 : vector<1xf32> to vector<1x1xf32>
    %cst_21 = arith.constant 0.000000e+00 : f32
    %58 = vector.broadcast %cst_21 : f32 to vector<24x24xf32>
    %59 = arith.select %51, %49, %58 : vector<24x24xi1>, vector<24x24xf32>
    %cst_22 = arith.constant dense<0.000000e+00> : vector<24xf32>
    %60 = vector.multi_reduction <add>, %59, %cst_22 [1] : vector<24x24xf32> to vector<24xf32>
    %61 = vector.shape_cast %60 : vector<24xf32> to vector<24x1xf32>
    %cst_23 = arith.constant dense<0.000000e+00> : vector<1xf32>
    %62 = vector.multi_reduction <add>, %61, %cst_23 [0] : vector<24x1xf32> to vector<1xf32>
    %63 = vector.shape_cast %62 : vector<1xf32> to vector<1x1xf32>
    %64 = arith.andi %51, %53 : vector<24x24xi1>
    %cst_24 = arith.constant 0.000000e+00 : f32
    %65 = vector.broadcast %cst_24 : f32 to vector<24x24xf32>
    %66 = arith.select %64, %49, %65 : vector<24x24xi1>, vector<24x24xf32>
    %cst_25 = arith.constant dense<0.000000e+00> : vector<24xf32>
    %67 = vector.multi_reduction <add>, %66, %cst_25 [1] : vector<24x24xf32> to vector<24xf32>
    %68 = vector.shape_cast %67 : vector<24xf32> to vector<24x1xf32>
    %cst_26 = arith.constant dense<0.000000e+00> : vector<1xf32>
    %69 = vector.multi_reduction <add>, %68, %cst_26 [0] : vector<24x1xf32> to vector<1xf32>
    %70 = vector.shape_cast %69 : vector<1xf32> to vector<1x1xf32>
    %71 = arith.subf %63, %70 : vector<1x1xf32>
    %cst_27 = arith.constant 2.000000e+00 : f32
    %72 = vector.broadcast %cst_27 : f32 to vector<1x1xf32>
    %73 = arith.mulf %72, %63 : vector<1x1xf32>
    %74 = arith.subf %57, %73 : vector<1x1xf32>
    %75 = arith.addf %74, %70 : vector<1x1xf32>
    %cst_28 = arith.constant 8.000000e-05 : f32
    %76 = vector.broadcast %cst_28 : f32 to vector<1x1xf32>
    %77 = arith.addf %70, %76 : vector<1x1xf32>
    %cst_29 = arith.constant 1.600000e-04 : f32
    %78 = vector.broadcast %cst_29 : f32 to vector<1x1xf32>
    %79 = arith.addf %75, %78 : vector<1x1xf32>
    %cst_30 = arith.constant 0.0178571437 : f32
    %80 = vector.broadcast %cst_30 : f32 to vector<1x1xf32>
    %81 = arith.mulf %77, %80 : vector<1x1xf32>
    %cst_31 = arith.constant 0.00416666688 : f32
    %82 = vector.broadcast %cst_31 : f32 to vector<1x1xf32>
    %83 = arith.mulf %79, %82 : vector<1x1xf32>
    %84 = arith.addf %81, %83 : vector<1x1xf32>
    %cst_32 = arith.constant 1.562500e-02 : f32
    %85 = vector.broadcast %cst_32 : f32 to vector<1x1xf32>
    %86 = arith.mulf %71, %85 : vector<1x1xf32>
    %87 = arith.subf %84, %86 : vector<1x1xf32>
    %cst_33 = arith.constant 1.000000e+02 : f32
    %88 = vector.broadcast %cst_33 : f32 to vector<1x1xf32>
    %89 = arith.mulf %88, %87 : vector<1x1xf32>
    %c0_34 = arith.constant 0 : index
    %c0_35 = arith.constant 0 : index
    %90 = vector.load %arg2[%c0_34, %c0_35] : memref<8x8xf32, #tpu.memory_space<vmem>>, vector<8x8xf32>
    %cst_36 = arith.constant dense<0xFF800000> : vector<8xf32>
    %91 = vector.multi_reduction <maximumf>, %90, %cst_36 [1] : vector<8x8xf32> to vector<8xf32>
    %92 = vector.shape_cast %91 : vector<8xf32> to vector<8x1xf32>
    %93 = vector.broadcast %92 : vector<8x1xf32> to vector<8x8xf32>
    %94 = arith.subf %90, %93 : vector<8x8xf32>
    %95 = math.exp %94 : vector<8x8xf32>
    %cst_37 = arith.constant dense<0.000000e+00> : vector<8xf32>
    %96 = vector.multi_reduction <add>, %95, %cst_37 [1] : vector<8x8xf32> to vector<8xf32>
    %97 = vector.shape_cast %96 : vector<8xf32> to vector<8x1xf32>
    %98 = math.log %97 : vector<8x1xf32>
    %99 = arith.addf %92, %98 : vector<8x1xf32>
    %100 = tpu.iota {dimensions = array<i32: 0>} : vector<8x8xi32>
    %101 = tpu.iota {dimensions = array<i32: 1>} : vector<8x8xi32>
    %cst_38 = arith.constant 0.000000e+00 : f32
    %102 = vector.broadcast %cst_38 : f32 to vector<8x8xf32>
    %c0_i32_39 = arith.constant 0 : i32
    %103 = vector.broadcast %c0_i32_39 : i32 to vector<8x8xi32>
    %104 = arith.cmpi eq, %100, %103 : vector<8x8xi32>
    %c0_40 = arith.constant 0 : index
    %105 = memref.load %arg1[%c0_40] : memref<8xi32, #tpu.memory_space<smem>>
    %106 = vector.broadcast %105 : i32 to vector<8x8xi32>
    %107 = arith.cmpi eq, %101, %106 : vector<8x8xi32>
    %108 = arith.andi %104, %107 : vector<8x8xi1>
    %cst_41 = arith.constant 1.000000e+00 : f32
    %109 = vector.broadcast %cst_41 : f32 to vector<8x8xf32>
    %110 = arith.select %108, %109, %102 : vector<8x8xi1>, vector<8x8xf32>
    %c1_i32_42 = arith.constant 1 : i32
    %111 = vector.broadcast %c1_i32_42 : i32 to vector<8x8xi32>
    %112 = arith.cmpi eq, %100, %111 : vector<8x8xi32>
    %c1 = arith.constant 1 : index
    %113 = memref.load %arg1[%c1] : memref<8xi32, #tpu.memory_space<smem>>
    %114 = vector.broadcast %113 : i32 to vector<8x8xi32>
    %115 = arith.cmpi eq, %101, %114 : vector<8x8xi32>
    %116 = arith.andi %112, %115 : vector<8x8xi1>
    %cst_43 = arith.constant 1.000000e+00 : f32
    %117 = vector.broadcast %cst_43 : f32 to vector<8x8xf32>
    %118 = arith.select %116, %117, %110 : vector<8x8xi1>, vector<8x8xf32>
    %c2_i32 = arith.constant 2 : i32
    %119 = vector.broadcast %c2_i32 : i32 to vector<8x8xi32>
    %120 = arith.cmpi eq, %100, %119 : vector<8x8xi32>
    %c2 = arith.constant 2 : index
    %121 = memref.load %arg1[%c2] : memref<8xi32, #tpu.memory_space<smem>>
    %122 = vector.broadcast %121 : i32 to vector<8x8xi32>
    %123 = arith.cmpi eq, %101, %122 : vector<8x8xi32>
    %124 = arith.andi %120, %123 : vector<8x8xi1>
    %cst_44 = arith.constant 1.000000e+00 : f32
    %125 = vector.broadcast %cst_44 : f32 to vector<8x8xf32>
    %126 = arith.select %124, %125, %118 : vector<8x8xi1>, vector<8x8xf32>
    %c3_i32 = arith.constant 3 : i32
    %127 = vector.broadcast %c3_i32 : i32 to vector<8x8xi32>
    %128 = arith.cmpi eq, %100, %127 : vector<8x8xi32>
    %c3 = arith.constant 3 : index
    %129 = memref.load %arg1[%c3] : memref<8xi32, #tpu.memory_space<smem>>
    %130 = vector.broadcast %129 : i32 to vector<8x8xi32>
    %131 = arith.cmpi eq, %101, %130 : vector<8x8xi32>
    %132 = arith.andi %128, %131 : vector<8x8xi1>
    %cst_45 = arith.constant 1.000000e+00 : f32
    %133 = vector.broadcast %cst_45 : f32 to vector<8x8xf32>
    %134 = arith.select %132, %133, %126 : vector<8x8xi1>, vector<8x8xf32>
    %c4_i32 = arith.constant 4 : i32
    %135 = vector.broadcast %c4_i32 : i32 to vector<8x8xi32>
    %136 = arith.cmpi eq, %100, %135 : vector<8x8xi32>
    %c4 = arith.constant 4 : index
    %137 = memref.load %arg1[%c4] : memref<8xi32, #tpu.memory_space<smem>>
    %138 = vector.broadcast %137 : i32 to vector<8x8xi32>
    %139 = arith.cmpi eq, %101, %138 : vector<8x8xi32>
    %140 = arith.andi %136, %139 : vector<8x8xi1>
    %cst_46 = arith.constant 1.000000e+00 : f32
    %141 = vector.broadcast %cst_46 : f32 to vector<8x8xf32>
    %142 = arith.select %140, %141, %134 : vector<8x8xi1>, vector<8x8xf32>
    %c5_i32 = arith.constant 5 : i32
    %143 = vector.broadcast %c5_i32 : i32 to vector<8x8xi32>
    %144 = arith.cmpi eq, %100, %143 : vector<8x8xi32>
    %c5 = arith.constant 5 : index
    %145 = memref.load %arg1[%c5] : memref<8xi32, #tpu.memory_space<smem>>
    %146 = vector.broadcast %145 : i32 to vector<8x8xi32>
    %147 = arith.cmpi eq, %101, %146 : vector<8x8xi32>
    %148 = arith.andi %144, %147 : vector<8x8xi1>
    %cst_47 = arith.constant 1.000000e+00 : f32
    %149 = vector.broadcast %cst_47 : f32 to vector<8x8xf32>
    %150 = arith.select %148, %149, %142 : vector<8x8xi1>, vector<8x8xf32>
    %c6_i32 = arith.constant 6 : i32
    %151 = vector.broadcast %c6_i32 : i32 to vector<8x8xi32>
    %152 = arith.cmpi eq, %100, %151 : vector<8x8xi32>
    %c6 = arith.constant 6 : index
    %153 = memref.load %arg1[%c6] : memref<8xi32, #tpu.memory_space<smem>>
    %154 = vector.broadcast %153 : i32 to vector<8x8xi32>
    %155 = arith.cmpi eq, %101, %154 : vector<8x8xi32>
    %156 = arith.andi %152, %155 : vector<8x8xi1>
    %cst_48 = arith.constant 1.000000e+00 : f32
    %157 = vector.broadcast %cst_48 : f32 to vector<8x8xf32>
    %158 = arith.select %156, %157, %150 : vector<8x8xi1>, vector<8x8xf32>
    %c7_i32 = arith.constant 7 : i32
    %159 = vector.broadcast %c7_i32 : i32 to vector<8x8xi32>
    %160 = arith.cmpi eq, %100, %159 : vector<8x8xi32>
    %c7 = arith.constant 7 : index
    %161 = memref.load %arg1[%c7] : memref<8xi32, #tpu.memory_space<smem>>
    %162 = vector.broadcast %161 : i32 to vector<8x8xi32>
    %163 = arith.cmpi eq, %101, %162 : vector<8x8xi32>
    %164 = arith.andi %160, %163 : vector<8x8xi1>
    %cst_49 = arith.constant 1.000000e+00 : f32
    %165 = vector.broadcast %cst_49 : f32 to vector<8x8xf32>
    %166 = arith.select %164, %165, %158 : vector<8x8xi1>, vector<8x8xf32>
    %cst_50 = arith.constant dense<0.000000e+00> : vector<8xf32>
    %167 = vector.multi_reduction <add>, %99, %cst_50 [1] : vector<8x1xf32> to vector<8xf32>
    %168 = vector.shape_cast %167 : vector<8xf32> to vector<8x1xf32>
    %cst_51 = arith.constant dense<0.000000e+00> : vector<1xf32>
    %169 = vector.multi_reduction <add>, %168, %cst_51 [0] : vector<8x1xf32> to vector<1xf32>
    %170 = vector.shape_cast %169 : vector<1xf32> to vector<1x1xf32>
    %171 = arith.mulf %166, %90 : vector<8x8xf32>
    %cst_52 = arith.constant dense<0.000000e+00> : vector<8xf32>
    %172 = vector.multi_reduction <add>, %171, %cst_52 [1] : vector<8x8xf32> to vector<8xf32>
    %173 = vector.shape_cast %172 : vector<8xf32> to vector<8x1xf32>
    %cst_53 = arith.constant dense<0.000000e+00> : vector<1xf32>
    %174 = vector.multi_reduction <add>, %173, %cst_53 [0] : vector<8x1xf32> to vector<1xf32>
    %175 = vector.shape_cast %174 : vector<1xf32> to vector<1x1xf32>
    %176 = arith.subf %170, %175 : vector<1x1xf32>
    %cst_54 = arith.constant 1.250000e-01 : f32
    %177 = vector.broadcast %cst_54 : f32 to vector<1x1xf32>
    %178 = arith.mulf %176, %177 : vector<1x1xf32>
    %179 = tpu.iota {dimensions = array<i32: 1>} : vector<1x128xi32>
    %180 = arith.addf %178, %89 : vector<1x1xf32>
    %c0_i32_55 = arith.constant 0 : i32
    %181 = vector.broadcast %c0_i32_55 : i32 to vector<1x128xi32>
    %182 = arith.cmpi eq, %179, %181 : vector<1x128xi32>
    %c1_i32_56 = arith.constant 1 : i32
    %183 = vector.broadcast %c1_i32_56 : i32 to vector<1x128xi32>
    %184 = arith.cmpi eq, %179, %183 : vector<1x128xi32>
    %c2_i32_57 = arith.constant 2 : i32
    %185 = vector.broadcast %c2_i32_57 : i32 to vector<1x128xi32>
    %186 = arith.cmpi eq, %179, %185 : vector<1x128xi32>
    %cst_58 = arith.constant 0.000000e+00 : f32
    %187 = vector.shape_cast %89 : vector<1x1xf32> to vector<1x1xf32>
    %188 = vector.broadcast %187 : vector<1x1xf32> to vector<1x128xf32>
    %189 = vector.broadcast %cst_58 : f32 to vector<1x128xf32>
    %190 = arith.select %186, %188, %189 : vector<1x128xi1>, vector<1x128xf32>
    %191 = vector.shape_cast %178 : vector<1x1xf32> to vector<1x1xf32>
    %192 = vector.broadcast %191 : vector<1x1xf32> to vector<1x128xf32>
    %193 = arith.select %184, %192, %190 : vector<1x128xi1>, vector<1x128xf32>
    %194 = vector.shape_cast %180 : vector<1x1xf32> to vector<1x1xf32>
    %195 = vector.broadcast %194 : vector<1x1xf32> to vector<1x128xf32>
    %196 = arith.select %182, %195, %193 : vector<1x128xi1>, vector<1x128xf32>
    %c0_59 = arith.constant 0 : index
    %c0_60 = arith.constant 0 : index
    %197 = vector.load %arg5[%c0_59, %c0_60] : memref<1x128xf32, #tpu.memory_space<vmem>>, vector<1x128xf32>
    tpu.vector_store %arg5[%c0_59, %c0_60], %196 {strides = array<i32>} : memref<1x128xf32, #tpu.memory_space<vmem>>, vector<1x128xf32>,
    return
  }
  func.func @transform_0(%arg0: i32) -> i32 {
    %c0_i32 = arith.constant 0 : i32
    %c0_i32_0 = arith.constant 0 : i32
    return %c0_i32 : i32
  }
  func.func @transform_1(%arg0: i32) -> (i32, i32) {
    %c0_i32 = arith.constant 0 : i32
    %c0_i32_0 = arith.constant 0 : i32
    %c0_i32_1 = arith.constant 0 : i32
    return %c0_i32, %c0_i32_0 : i32, i32
  }
  func.func @transform_2(%arg0: i32) -> (i32, i32) {
    %c0_i32 = arith.constant 0 : i32
    %c0_i32_0 = arith.constant 0 : i32
    %c0_i32_1 = arith.constant 0 : i32
    return %c0_i32, %c0_i32_0 : i32, i32
  }
  func.func @transform_3(%arg0: i32) -> (i32, i32) {
    %c0_i32 = arith.constant 0 : i32
    %c0_i32_0 = arith.constant 0 : i32
    %c0_i32_1 = arith.constant 0 : i32
    return %c0_i32, %c0_i32_0 : i32, i32
  }
  func.func @transform_4(%arg0: i32) -> (i32, i32) {
    %c0_i32 = arith.constant 0 : i32
    %c0_i32_0 = arith.constant 0 : i32
    %c0_i32_1 = arith.constant 0 : i32
    return %c0_i32, %c0_i32_0 : i32, i32
  }
}

</mosaic_0001>

<bundles_post_ra>
// kernel: tpu_custom_call.1
= control target key start
LH: loop header
LB: loop body
LE: loop exit
PB: predicated region body
PF: predicated region fallthrough
CT: control target
= control target key end

     0   :  { %9 = vsyncpa [#allocation5], 0  ;;  %s978_s0 = inlined_call_operand.hbm [shape: s32[8], index: 0, kind: input, shape index: {}]   ;;  %s979_s1 = inlined_call_operand.hbm [shape: f32[8,8], index: 1, kind: input, shape index: {}]   ;;  %s980_s2 = inlined_call_operand.hbm [shape: f32[8,32], index: 2, kind: input, shape index: {}]   ;;  %s981_s3 = inlined_call_operand.hbm [shape: f32[16,32], index: 3, kind: input, shape index: {}]   ;;  %s982_s4 = inlined_call_operand.hbm [shape: f32[1,128], index: 4, kind: output, shape index: {}]  }
   0x1   :  { %10 = vsyncpa [#allocation3], 0 }
   0x2   :  { %11 = vsyncpa [#allocation8], 0 }
   0x3   :  { %12 = vsyncpa [#allocation4], 0  ;;  %s786_s15 = smov [#allocation7]   ;;  %s787_s17 = smov [#allocation6]  }
   0x4   :  { %s37_s16 = sshll.u32 %s786_s15, 4  ;;  %s27_s18 = sshll.u32 %s787_s17, 4  ;;  %s38_s16 = int_to_ptr.vmem [resolvable:$true] %s37_s16  ;;  %s28_s18 = int_to_ptr.vmem [resolvable:$true] %s27_s18 }
   0x5   :  { %s674_s19 = scalar_lea.vmem %s38_s16, 128  ;;  %p679_p1 = scmp.lt.s32.totalorder %s38_s16, %s38_s16 }
   0x6   :  { %p675_p0 = scmp.ne.s32.totalorder %s38_s16, %s674_s19  ;;  %p680_p2 = scmp.lt.s32.totalorder %s674_s19, %s674_s19 }
   0x8   :  { %p681_p3 = por %p680_p2, %p679_p1 }
   0xa   :  { %p682_p4 = pnand %p681_p3, %p675_p0 }
   0xc   :  { %685 = shalt.err (!%p682_p4)
}
   0xd   :  { %40 = dma.hbm_to_vmem [thread:$0]  %s980_s2, 128, %s38_s16, [#allocation8]  }
   0xe   :  { %s788_s22 = smov [#allocation2]   ;;  %s702_s25 = scalar_lea.vmem %s28_s18, 128 }
   0xf   :  { %20 = dma.hbm_to_smem %s978_s0, 16, %s788_s22, [#allocation5]  }
  0x10   :  { %p703_p5 = scmp.ne.s32.totalorder %s28_s18, %s702_s25  ;;  %p707_p6 = scmp.lt.s32.totalorder %s28_s18, %s28_s18 }
  0x11   :  { %p708_p7 = scmp.lt.s32.totalorder %s702_s25, %s702_s25 }
  0x13   :  { %p709_p8 = por %p708_p7, %p707_p6 }
  0x15   :  { %p710_p9 = pnand %p709_p8, %p703_p5 }
  0x17   :  { %713 = shalt.err (!%p710_p9)
}
  0x18   :  { %30 = dma.hbm_to_vmem [thread:$0]  %s979_s1, 128, %s28_s18, [#allocation3]  }
  0x19   :  { %s789_s28 = smov [#allocation9]  }
  0x1a   :  { %s46_s29 = sshll.u32 %s789_s28, 4  ;;  %s47_s29 = int_to_ptr.vmem [resolvable:$true] %s46_s29 }
  0x1b   :  { %s722_s2 = scalar_lea.vmem %s47_s29, 256  ;;  %p727_p11 = scmp.lt.s32.totalorder %s47_s29, %s47_s29 }
  0x1c   :  { %p723_p10 = scmp.ne.s32.totalorder %s47_s29, %s722_s2  ;;  %p728_p12 = scmp.lt.s32.totalorder %s722_s2, %s722_s2 }
  0x1e   :  { %p729_p13 = por %p728_p12, %p727_p11 }
  0x20   :  { %p730_p0 = pnand %p729_p13, %p723_p10 }
  0x22   :  { %733 = shalt.err (!%p730_p0)
}
  0x23   :  { %s790_s0 = smov 128   ;;  %s791_s30 = smov 8  }
  0x24   :  { %52 = dma.hbm_to_vmem [thread:$0]  %s981_s3, 256, %s47_s29, [#allocation8], %s790_s0, %s790_s0, %s791_s30  }
  0x25   :  { %766 = dma.done.wait [#allocation5], 16  }
  0x26   :  { %767 = vsyncadd [#allocation5], 4294967280 }
  0x27   :  { %768 = dma.done.wait [#allocation3], 128  }
  0x28   :  { %769 = vsyncadd [#allocation3], 4294967168 }
  0x29   :  { %770 = dma.done.wait [#allocation8], 384  }
  0x2a   :  { %771 = vsyncadd [#allocation8], 4294966912 }
  0x2b   :  { %65 = sfence }
  0x2c   :  { %v66_v0 = vld [vmem:[#allocation7] sm:$0xff]  ;;  %vm70_vm0 = vcmask 261120   ;;  %v68_v3 = vld [vmem:[#allocation9 + $0x8] sm:$0xff]  ;;  %v67_v4 = vld [vmem:[#allocation9] sm:$0xff]  ;;  %v792_v5 = vmov 0.0   ;;  %vm793_vm1 = vmmov 0   ;;  %v259_v16 = vlaneseq }
  0x2d   :  { %v69_v1 = vmul.f32 %v66_v0, %v66_v0  ;;  %591 = vmatprep.subr.mxu0 %v792_v5  ;;  %606 = vmatprep.subr.mxu1 %v792_v5  ;;  %v167_v6 = vmul.f32 %v68_v3, %v68_v3  ;;  %v166_v7 = vmul.f32 %v67_v4, %v67_v4  ;;  %v794_v15 = vmov 1.0   ;;  %s906_s1 = smov 0  }
  0x2e   :  { %592 = vmatpush3.xpose.msk.msra.mxu0 %vm70_vm0, %v68_v3  ;;  %597 = vmatprep.mubr.msk.f32.mxu0 %vm793_vm1, %v792_v5  ;;  %v862_v17 = vshrl.u32 %v259_v16, 7  ;;  %v865_v24 = vand.u32 127, %v259_v16  ;;  %vm293_vm6 = vcmask 195584  }
  0x2f   :  { %v71_v2 = vsel %vm70_vm0, %v69_v1, 0.0  ;;  %607 = vmatpush3.xpose.msk.msra.mxu1 %vm70_vm0, %v167_v6  ;;  %593 = vmatprep.subr.mxu0 %v792_v5  ;;  %v171_v8 = vsel %vm70_vm0, %v166_v7, 0.0  ;;  %v174_v9 = vsel %vm70_vm0, %v167_v6, 0.0 }
  0x30   :  { %72 = vadd.xlane.f32.xlu0 %v71_v2  ;;  %608 = vmatprep.subr.mxu1 %v792_v5  ;;  %v267_v18 = vsub.s32 0, %v862_v17  ;;  %v868_v28 = vadd.s32 8, %v862_v17  ;;  %vm281_vm2 = vcmp.eq.s32.totalorder %v862_v17, %v865_v24  ;;  %vm287_vm3 = vcmp.gt.s32.totalorder %v865_v24, %v862_v17 }
  0x31   :  { %612 = vmatprep.mubr.msk.f32.mxu1 %vm793_vm1, %v792_v5  ;;  %172 = vadd.xlane.f32.xlu1 %v171_v8  ;;  %v879_v38 = vadd.s32 16, %v862_v17 }
  0x32   :  { %594 = vmatpush3.xpose.msk.msra.mxu0 %vm70_vm0, %v67_v4  ;;  %vm282_vm4 = vcmp.eq.s32.totalorder %v868_v28, %v865_v24  ;;  %vm288_vm5 = vcmp.gt.s32.totalorder %v865_v24, %v868_v28 }
  0x33   :  { %609 = vmatpush3.xpose.msk.msra.mxu1 %vm70_vm0, %v166_v7  ;;  %595 = vmatprep.subr.mxu0 %v792_v5  ;;  %vm283_vm7 = vcmp.eq.s32.totalorder %v879_v38, %v865_v24  ;;  %vm289_vm8 = vcmp.gt.s32.totalorder %v865_v24, %v879_v38 }
  0x34   :  { %610 = vmatprep.subr.mxu1 %v792_v5 }
  0x35   :  { %175 = vadd.xlane.f32.xlu1 %v174_v9 }
  0xb9   :  { %v73_v10 = vpop.xlane.xlu0 %72 }
  0xba   :  { %650 = vrsqrt.f32 %v73_v10  ;;  %v173_v19 = vpop.xlane.xlu1 %172 }
  0xbe   :  { %v176_v33 = vpop.xlane.xlu1 %175 }
  0xc7   :  { %v651_v11 = vpop.eup %650 }
  0xc8   :  { %v75_v12 = vmul.f32 %v651_v11, %v66_v0 }
  0xca   :  { %596 = vmatpush3.xpose.msk.msra.mxu0 %vm70_vm0, %v75_v12  ;;  %v165_v13 = vmul.f32 %v75_v12, %v75_v12 }
  0xcc   :  { %611 = vmatpush3.xpose.msk.msra.mxu1 %vm70_vm0, %v165_v13  ;;  %v168_v14 = vsel %vm70_vm0, %v165_v13, 0.0 }
  0xcd   :  { %169 = vadd.xlane.f32.xlu0 %v168_v14  ;;  %598 = vmatmul.mubr.msk.f32.vlgmr.msra.gmra.mxu0 %vm70_vm0, %v75_v12 }
  0xce   :  { %600 = vmatprep.mubr.msk.f32.mxu0 %vm793_vm1, %v792_v5 }
  0xcf   :  { %613 = vmatmul.mubr.msk.f32.vlgmr.msra.gmra.mxu1 %vm70_vm0, %v794_v15 }
  0xd1   :  { %601 = vmatmul.mubr.msk.f32.gmra.mxu0 %vm70_vm0, %v67_v4 }
  0xd2   :  { %603 = vmatprep.mubr.msk.f32.mxu0 %vm793_vm1, %v792_v5 }
  0xd5   :  { %604 = vmatmul.mubr.msk.f32.gmra.mxu0 %vm70_vm0, %v68_v3  ;;  %v778_v3 = vmov 0.0  }
 0x156   :  { %v170_v23 = vpop.xlane.xlu0 %169 }
 0x18d   :  { %v151_v20 = vpop.f32.mrf.mxu0 }
 0x18e   :  { %v272_v29 = vmul.f32 2.0, %v151_v20 }
 0x18f   :  { %v599_v21 = vpop.f32.mrf.mxu0  ;;  %v255_v22 = vpop.f32.mrf.mxu1 }
 0x190   :  { %v268_v25 = vrot.slane %v255_v22, %v267_v18 }
 0x191   :  { %v156_v26 = vpop.f32.mrf.mxu0  ;;  %v614_v27 = vpop.f32.mrf.mxu1 }
 0x192   :  { %v269_v30 = vadd.f32 %v268_v25, %v170_v23  ;;  %v270_v31 = vadd.f32 %v268_v25, %v173_v19  ;;  %v273_v32 = vmul.f32 2.0, %v156_v26  ;;  %v271_v39 = vadd.f32 %v268_v25, %v176_v33 }
 0x193   :  { %v602_v34 = vpop.f32.mrf.mxu0 }
 0x194   :  { %v276_v35 = vsub.f32 %v270_v31, %v273_v32  ;;  %v275_v36 = vsub.f32 %v269_v30, %v272_v29 }
 0x195   :  { %v161_v37 = vpop.f32.mrf.mxu0 }
 0x196   :  { %v279_v40 = vmax.f32 %v276_v35, 0.0  ;;  %v274_v41 = vmul.f32 2.0, %v161_v37  ;;  %v278_v42 = vmax.f32 %v275_v36, 0.0 }
 0x197   :  { %v605_v43 = vpop.f32.mrf.mxu0 }
 0x198   :  { %v277_v44 = vsub.f32 %v271_v39, %v274_v41  ;;  %v881_v45 = vsel %vm281_vm2, 0.0, %v278_v42  ;;  %v883_v46 = vsel %vm282_vm4, 0.0, %v279_v40 }
 0x199   :  { %v290_v47 = vsel %vm287_vm3, %v881_v45, 0.0  ;;  %v291_v48 = vsel %vm288_vm5, %v883_v46, 0.0 }
 0x19a   :  { %v280_v49 = vmax.f32 %v277_v44, 0.0  ;;  %v294_v50 = vsel %vm293_vm6, %v290_v47, -inf  ;;  %v297_v51 = vsel %vm293_vm6, %v291_v48, -inf }
 0x19b   :  { %295 = vmax.xlane.f32.xlu0 %v294_v50  ;;  %298 = vmax.xlane.f32.xlu1 %v297_v51 }
 0x19c   :  { %v899_v52 = vsel %vm283_vm7, 0.0, %v280_v49 }
 0x19d   :  { %v292_v53 = vsel %vm289_vm8, %v899_v52, 0.0 }
 0x19e   :  { %v300_v54 = vsel %vm293_vm6, %v292_v53, -inf }
 0x19f   :  { %301 = vmax.xlane.f32.xlu0 %v300_v54 }
 0x224   :  { %v296_v55 = vpop.xlane.xlu0 %295  ;;  %v299_v56 = vpop.xlane.xlu1 %298 }
 0x225   :  { %v303_v57 = vmax.f32 %v296_v55, %v299_v56 }
 0x228   :  { %v302_v58 = vpop.xlane.xlu0 %301 }
 0x229   :  { %v304_v59 = vmax.f32 %v303_v57, %v302_v58 }
 0x22b   :  { %v305_v60 = vrot.slane %v304_v59, 4 }
 0x22d   :  { %v306_v61 = vmax.f32 %v304_v59, %v305_v60 }
 0x22f   :  { %v307_v62 = vrot.slane %v306_v61, 2 }
 0x231   :  { %v308_v63 = vmax.f32 %v306_v61, %v307_v62 }
 0x233   :  { %v309_v0 = vrot.slane %v308_v63, 1 }
 0x235   :  { %v310_v1 = vmax.f32 %v308_v63, %v309_v0  }
 0x237   :  { %v774_v2 = vmov %v310_v1  }
 0x238 LB: > { %v319_v4 = vadd.f32 %v776_v2, %v780_v3  ;;  %v795_v7 = vmov 0.0   ;;  %s316_s1 = sadd.s32 1, %s784_s1   ;;  %s784_s1 = sphi %s906_s1, %s316_s1   ;;  %v780_v3 = vphi %v778_v3, %v348_v3   ;;  %v776_v2 = vphi %v774_v2, %v775_v2  }
 0x239   : > { %p313_p1 = scmp.ge.s32.totalorder %s316_s1, 40  }
 0x23a   : > { %v320_v6 = vmul.f32 0.5, %v319_v4  ;;  %v929_v29 = vld [vmem:[#allocation6] sm:$0xff] (%p313_p1)  ;;  %vm448_vm0 = vcmask (%p313_p1), 64512   ;;  %s462_s3 = sld [smem:[#allocation2]] (%p313_p1)  ;;  %vm467_vm7 = vcmp.eq.s32.totalorder (%p313_p1), %v862_v17, 1  ;;  %s796_s14 = smov (%p313_p1), [#allocation10]  }
 0x23b   :  { %v449_v30 = vsel (%p313_p1), %vm448_vm0, %v929_v29, -inf  ;;  %s574_s7 = sld [smem:[#allocation2 + $0x1]] (%p313_p1)  ;;  %s542_s15 = sshll.u32 (%p313_p1), %s796_s14, 4  ;;  %s543_s15 = int_to_ptr.vmem [resolvable:$true] %s542_s15 }
 0x23c   : > { %vm321_vm9 = vcmp.le.f32.partialorder %v881_v45, %v320_v6  ;;  %vm322_vm10 = vcmp.le.f32.partialorder %v883_v46, %v320_v6  ;;  %vm323_vm11 = vcmp.le.f32.partialorder %v899_v52, %v320_v6  ;;  %s575_s8 = sld [smem:[#allocation2 + $0x2]] (%p313_p1)  ;;  %s734_s16 = scalar_lea.vmem (%p313_p1), %s543_s15, 16 }
 0x23d   : > { %vm324_vm12 = vmand %vm287_vm3, %vm321_vm9  ;;  %s576_s9 = sld [smem:[#allocation2 + $0x3]] (%p313_p1)  ;;  %vm461_vm3 = vcmp.eq.s32.totalorder (%p313_p1), %v862_v17, 0  ;;  %vm473_vm9 = vcmp.eq.s32.totalorder (%p313_p1), %v862_v17, 2  ;;  %p735_p2 = scmp.ne.s32.totalorder (%p313_p1), %s543_s15, %s734_s16 }
 0x23e   : > { %v327_v8 = vsel %vm324_vm12, 1.0, %v795_v7  ;;  %vm325_vm13 = vmand %vm288_vm5, %vm322_vm10  ;;  %s577_s10 = sld [smem:[#allocation2 + $0x4]] (%p313_p1)  ;;  %s738_s17 = scalar_lea.vmem (%p313_p1), %s543_s15, 32 }
 0x23f   : > { %v330_v9 = vsel %vm293_vm6, %v327_v8, 0.0  ;;  %v328_v10 = vsel %vm325_vm13, 1.0, %v795_v7  ;;  %vm326_vm14 = vmand %vm289_vm8, %vm323_vm11  ;;  %s578_s11 = sld [smem:[#allocation2 + $0x5]] (%p313_p1)  ;;  %vm479_vm13 = vcmp.eq.s32.totalorder (%p313_p1), %v862_v17, 3  ;;  %p739_p3 = scmp.lt.s32.totalorder (%p313_p1), %s543_s15, %s543_s15 }
 0x240   : > { %331 = vadd.xlane.f32.xlu0 %v330_v9  ;;  %v329_v11 = vsel %vm326_vm14, 1.0, %v795_v7  ;;  %v333_v12 = vsel %vm293_vm6, %v328_v10, 0.0  ;;  %v463_v38 = vstv (%p313_p1), %s462_s3  ;;  %s579_s12 = sld [smem:[#allocation2 + $0x6]] (%p313_p1)  ;;  %p740_p4 = scmp.lt.s32.totalorder (%p313_p1), %s738_s17, %s734_s16 }
 0x241   : > { %v336_v13 = vsel %vm293_vm6, %v329_v11, 0.0  ;;  %vm464_vm4 = vcmp.eq.s32.totalorder (%p313_p1), %v865_v24, %v463_v38  ;;  %v469_v41 = vstv (%p313_p1), %s574_s7  ;;  %s580_s13 = sld [smem:[#allocation2 + $0x7]] (%p313_p1) }
 0x242   : > { %337 = vadd.xlane.f32.xlu1 %v336_v13  ;;  %vm465_vm5 = vmand (%p313_p1), %vm461_vm3, %vm464_vm4  ;;  %vm470_vm8 = vcmp.eq.s32.totalorder (%p313_p1), %v865_v24, %v469_v41  ;;  %v475_v47 = vstv (%p313_p1), %s575_s8  ;;  %vm491_vm4 = vcmp.eq.s32.totalorder (%p313_p1), %v862_v17, 5  ;;  %p741_p5 = por (%p313_p1), %p740_p4, %p739_p3 }
 0x243   :  { %v466_v50 = vsel (%p313_p1), %vm465_vm5, 1.0, %v792_v5  ;;  %vm471_vm10 = vmand (%p313_p1), %vm467_vm7, %vm470_vm8  ;;  %vm476_vm11 = vcmp.eq.s32.totalorder (%p313_p1), %v865_v24, %v475_v47  ;;  %vm497_vm8 = vcmp.eq.s32.totalorder (%p313_p1), %v862_v17, 6 }
 0x244   : > { %334 = vadd.xlane.f32.xlu0 %v333_v12  ;;  %vm477_vm12 = vmand (%p313_p1), %vm473_vm9, %vm476_vm11  ;;  %vm503_vm11 = vcmp.eq.s32.totalorder (%p313_p1), %v862_v17, 7  ;;  %p742_p6 = pnand (%p313_p1), %p741_p5, %p735_p2 }
 0x245   :  { %v493_v54 = vstv (%p313_p1), %s578_s11 }
 0x246   :  { %399 = vadd.xlane.f32.xlu1 (%p313_p1), %v792_v5  ;;  %vm494_vm5 = vcmp.eq.s32.totalorder (%p313_p1), %v865_v24, %v493_v54  ;;  %v499_v56 = vstv (%p313_p1), %s579_s12 }
 0x247   :  { %vm951_vm7 = vmand (%p313_p1), %vm491_vm4, %vm494_vm5  ;;  %vm500_vm9 = vcmp.eq.s32.totalorder (%p313_p1), %v865_v24, %v499_v56  ;;  %v505_v59 = vstv (%p313_p1), %s580_s13 }
 0x248   :  { %450 = vmax.xlane.f32.xlu0 (%p313_p1), %v449_v30 }
 0x24c   :  { %402 = vadd.xlane.f32.xlu0 (%p313_p1), %v792_v5 }
 0x2c9   : > { %v332_v14 = vpop.xlane.xlu0 %331 }
 0x2cb   : > { %v338_v16 = vpop.xlane.xlu1 %337 }
 0x2cd   : > { %v335_v15 = vpop.xlane.xlu0 %334 }
 0x2ce   : > { %v339_v18 = vadd.f32 %v335_v15, %v332_v14 }
 0x2cf   :  { %v400_v14 = vpop.xlane.xlu1 (%p313_p1), %399 }
 0x2d0   : > { %v340_v19 = vadd.f32 %v339_v18, %v338_v16 }
 0x2d2   : > { %v341_v20 = vrot.slane %v340_v19, 4 }
 0x2d4   : > { %v342_v21 = vadd.f32 %v341_v20, %v340_v19 }
 0x2d6   : > { %v343_v22 = vrot.slane %v342_v21, 2 }
 0x2d8   : > { %v344_v23 = vadd.f32 %v343_v22, %v342_v21 }
 0x2da   : > { %v345_v25 = vrot.slane %v344_v23, 1 }
 0x2dc   : > { %v346_v26 = vadd.f32 %v345_v25, %v344_v23  ;;  %315 = sbr.rel (!%p313_p1) target bundleno = 568 (0x238), region = 59 }
 0x2de   : > { %vm347_vm15 = vcmp.gt.f32.partialorder %v346_v26, 137.5 }
 0x2df   : > { %v348_v3 = vsel %vm347_vm15, %v780_v3, %v320_v6   ;;  %v349_v27 = vsel %vm347_vm15, %v320_v6, %v776_v2  }
 0x2e0   : > { %v775_v2 = vmov %v349_v27   ;;  %652 = vrsqrt.f32 (%p313_p1), %v349_v27  ;;  %vm352_vm1 = vcmp.eq.f32.partialorder (%p313_p1), %v349_v27, inf  ;;  %v355_v32 = vand.u32 (%p313_p1), 2147483648, %v349_v27 }
 0x2e1   :  { %vm354_vm2 = vcmp.eq.f32.partialorder %v349_v27, 0.0 }
 0x2ed   :  { %v653_v31 = vpop.eup %652 }
 0x2ee   :  { %v351_v33 = vmul.f32 %v653_v31, %v349_v27 }
 0x2f0   :  { %v353_v34 = vsel %vm352_vm1, %v349_v27, %v351_v33  ;;  %vm485_vm1 = vcmp.eq.s32.totalorder %v862_v17, 4  ;;  %v451_v17 = vpop.xlane.xlu0 %450 }
 0x2f1   :  { %v356_v35 = vsel %vm354_vm2, %v355_v32, %v353_v34  ;;  %v452_v8 = vsub.f32 %v929_v29, %v451_v17 }
 0x2f2   :  { %v357_v36 = vmul.f32 0.5, %v356_v35 }
 0x2f3   :  { %v453_v9 = vmul.f32 1.442695, %v452_v8 }
 0x2f4   :  { %v358_v28 = vmul.f32 2.0, %v357_v36  ;;  %v403_v16 = vpop.xlane.xlu0 %402 }
 0x2f6   :  { %v359_v37 = vmul.f32 %v358_v28, %v357_v36 }
 0x2f8   :  { %654 = vrcp.f32 %v359_v37 }
 0x305   :  { %v655_v39 = vpop.eup %654 }
 0x306   :  { %v361_v40 = vmul.f32 -1.0, %v655_v39 }
 0x308   :  { %v362_v42 = vmul.f32 %v361_v40, %v881_v45  ;;  %v363_v43 = vmul.f32 %v361_v40, %v883_v46  ;;  %v364_v44 = vmul.f32 %v361_v40, %v899_v52  ;;  %v481_v45 = vstv %s576_s9 }
 0x309   :  { %v472_v46 = vsel %vm471_vm10, 1.0, %v466_v50  ;;  %vm482_vm14 = vcmp.eq.s32.totalorder %v865_v24, %v481_v45  ;;  %v487_v52 = vstv %s577_s10  ;;  %vm501_vm10 = vmand %vm497_vm8, %vm500_vm9 }
 0x30a   :  { %v365_v48 = vmul.f32 1.442695, %v362_v42  ;;  %v367_v49 = vmul.f32 1.442695, %v363_v43  ;;  %v369_v51 = vmul.f32 1.442695, %v364_v44  ;;  %vm483_vm15 = vmand %vm479_vm13, %vm482_vm14  ;;  %vm488_vm2 = vcmp.eq.s32.totalorder %v865_v24, %v487_v52 }
 0x30b   :  { %v478_v53 = vsel %vm477_vm12, 1.0, %v472_v46  ;;  %vm489_vm3 = vmand %vm485_vm1, %vm488_vm2  ;;  %vm506_vm12 = vcmp.eq.s32.totalorder %v865_v24, %v505_v59  ;;  %vm374_vm14 = vcmp.lt.s32.totalorder %v865_v24, 8 }
 0x30c   :  { %656 = vpow2.f32 %v365_v48  ;;  %v484_v55 = vsel %vm483_vm15, 1.0, %v478_v53  ;;  %vm507_vm13 = vmand %vm503_vm11, %vm506_vm12  ;;  %vm529_vm15 = vcmp.eq.s32.totalorder %v865_v24, 0 }
 0x30d   :  { %658 = vpow2.f32 %v367_v49  ;;  %v490_v57 = vsel %vm489_vm3, 1.0, %v484_v55 }
 0x30e   :  { %660 = vpow2.f32 %v369_v51  ;;  %v496_v63 = vsel %vm951_vm7, 1.0, %v490_v57 }
 0x30f   :  { %v502_v2 = vsel %vm501_vm10, 1.0, %v496_v63  ;;  %662 = vpow2.f32 %v453_v9 }
 0x310   :  { %v508_v4 = vsel %vm507_vm13, 1.0, %v502_v2 }
 0x311   :  { %v516_v6 = vmul.f32 %v508_v4, %v929_v29 }
 0x313   :  { %v517_v7 = vsel %vm448_vm0, %v516_v6, 0.0 }
 0x319   :  { %v657_v60 = vpop.eup %656 }
 0x31a   :  { %v659_v61 = vpop.eup %658  ;;  %v375_v62 = vsel %vm293_vm6, %v657_v60, 0.0  ;;  %v415_v11 = vsel %vm374_vm14, %v657_v60, 0.0 }
 0x31b   :  { %396 = vadd.xlane.f32.xlu1 %v375_v62  ;;  %376 = vadd.xlane.f32.xlu0 %v375_v62  ;;  %v378_v0 = vsel %vm293_vm6, %v659_v61, 0.0  ;;  %v661_v1 = vpop.eup %660  ;;  %v418_v13 = vsel %vm293_vm6, %v415_v11, 0.0 }
 0x31c   :  { %v381_v3 = vsel %vm293_vm6, %v661_v1, 0.0  ;;  %v663_v10 = vpop.eup %662  ;;  %vm531_vm6 = vcmp.eq.s32.totalorder %v865_v24, 2 }
 0x31d   :  { %v455_v12 = vsel %vm448_vm0, %v663_v10, 0.0  ;;  %vm530_vm0 = vcmp.eq.s32.totalorder %v865_v24, 1 }
 0x31f   :  { %379 = vadd.xlane.f32.xlu1 %v378_v0  ;;  %456 = vadd.xlane.f32.xlu0 %v455_v12 }
 0x323   :  { %382 = vadd.xlane.f32.xlu1 %v381_v3  ;;  %419 = vadd.xlane.f32.xlu0 %v418_v13 }
 0x327   :  { %422 = vadd.xlane.f32.xlu1 %v792_v5  ;;  %425 = vadd.xlane.f32.xlu0 %v792_v5 }
 0x32b   :  { %518 = vadd.xlane.f32.xlu1 %v517_v7 }
 0x3a4   :  { %v397_v15 = vpop.xlane.xlu1 %396  ;;  %v377_v20 = vpop.xlane.xlu0 %376 }
 0x3a5   :  { %v404_v18 = vadd.f32 %v400_v14, %v397_v15 }
 0x3a7   :  { %v405_v21 = vadd.f32 %v404_v18, %v403_v16 }
 0x3a8   :  { %v380_v19 = vpop.xlane.xlu1 %379  ;;  %v457_v31 = vpop.xlane.xlu0 %456 }
 0x3a9   :  { %v384_v22 = vadd.f32 %v380_v19, %v377_v20  ;;  %v406_v25 = vrot.slane %v405_v21, 4  ;;  %664 = vlog2.f32 %v457_v31 }
 0x3ab   :  { %v407_v27 = vadd.f32 %v406_v25, %v405_v21 }
 0x3ac   :  { %v383_v23 = vpop.xlane.xlu1 %382  ;;  %v420_v5 = vpop.xlane.xlu0 %419 }
 0x3ad   :  { %v385_v26 = vadd.f32 %v384_v22, %v383_v23  ;;  %v408_v30 = vrot.slane %v407_v27, 2 }
 0x3af   :  { %v386_v29 = vrot.slane %v385_v26, 4  ;;  %v409_v34 = vadd.f32 %v408_v30, %v407_v27 }
 0x3b0   :  { %v423_v33 = vpop.xlane.xlu1 %422  ;;  %v426_v38 = vpop.xlane.xlu0 %425 }
 0x3b1   :  { %v387_v32 = vadd.f32 %v386_v29, %v385_v26  ;;  %v427_v28 = vadd.f32 %v423_v33, %v420_v5  ;;  %v410_v37 = vrot.slane %v409_v34, 1 }
 0x3b3   :  { %v388_v35 = vrot.slane %v387_v32, 2  ;;  %v428_v40 = vadd.f32 %v427_v28, %v426_v38  ;;  %v411_v43 = vadd.f32 %v410_v37, %v409_v34 }
 0x3b4   :  { %v519_v36 = vpop.xlane.xlu1 %518 }
 0x3b5   :  { %v389_v39 = vadd.f32 %v388_v35, %v387_v32  ;;  %v520_v41 = vrot.slane %v519_v36, 4  ;;  %v429_v42 = vrot.slane %v428_v40, 4  ;;  %v436_v45 = vmul.f32 2.0, %v411_v43 }
 0x3b6   :  { %v665_v49 = vpop.eup %664 }
 0x3b7   :  { %v390_v44 = vrot.slane %v389_v39, 1  ;;  %v430_v47 = vadd.f32 %v429_v42, %v428_v40  ;;  %v521_v48 = vadd.f32 %v520_v41, %v519_v36  ;;  %v459_v50 = vmul.f32 0.6931472, %v665_v49 }
 0x3b9   :  { %v431_v51 = vrot.slane %v430_v47, 2  ;;  %v391_v46 = vadd.f32 %v390_v44, %v389_v39  ;;  %v460_v52 = vadd.f32 %v459_v50, %v451_v17  ;;  %v522_v54 = vrot.slane %v521_v48, 2 }
 0x3bb   :  { %v432_v53 = vadd.f32 %v431_v51, %v430_v47  ;;  %v510_v55 = vrot.slane %v460_v52, 4  ;;  %v437_v57 = vsub.f32 %v391_v46, %v436_v45  ;;  %v523_v60 = vadd.f32 %v522_v54, %v521_v48 }
 0x3bd   :  { %v433_v56 = vrot.slane %v432_v53, 1  ;;  %v511_v58 = vadd.f32 %v510_v55, %v460_v52  ;;  %v524_v2 = vrot.slane %v523_v60, 1 }
 0x3bf   :  { %v434_v59 = vadd.f32 %v433_v56, %v432_v53  ;;  %v512_v61 = vrot.slane %v511_v58, 2  ;;  %v525_v17 = vadd.f32 %v524_v2, %v523_v60 }
 0x3c1   :  { %v438_v62 = vadd.f32 %v437_v57, %v434_v59  ;;  %v439_v63 = vadd.f32 8e-05, %v434_v59  ;;  %v513_v0 = vadd.f32 %v512_v61, %v511_v58  ;;  %v435_v3 = vsub.f32 %v411_v43, %v434_v59 }
 0x3c3   :  { %v440_v1 = vadd.f32 0.00016, %v438_v62  ;;  %v441_v4 = vmul.f32 0.017857144, %v439_v63  ;;  %v514_v6 = vrot.slane %v513_v0, 1  ;;  %v444_v10 = vmul.f32 0.015625, %v435_v3 }
 0x3c5   :  { %v442_v7 = vmul.f32 0.004166667, %v440_v1  ;;  %v515_v8 = vadd.f32 %v514_v6, %v513_v0 }
 0x3c7   :  { %v443_v9 = vadd.f32 %v442_v7, %v441_v4  ;;  %v526_v11 = vsub.f32 %v515_v8, %v525_v17 }
 0x3c9   :  { %v445_v12 = vsub.f32 %v443_v9, %v444_v10  ;;  %v527_v13 = vmul.f32 0.125, %v526_v11 }
 0x3cb   :  { %v446_v14 = vmul.f32 100.0, %v445_v12 }
 0x3cd   :  { %v528_v15 = vadd.f32 %v527_v13, %v446_v14  ;;  %v532_v16 = vsel %vm531_vm6, %v446_v14, 0.0 }
 0x3ce   :  { %v533_v18 = vsel %vm530_vm0, %v527_v13, %v532_v16 }
 0x3cf   :  { %v534_v19 = vsel %vm529_vm15, %v528_v15, %v533_v18 }
 0x3d0   :  { %535 = vst [vmem:[#allocation10] sm:$0x1] %v534_v19 }
 0x3d1   :  { %745 = shalt.err (!%p742_p6)
}
 0x3d2   :  { %545 = dma.vmem_to_hbm [thread:$0]  %s543_s15, 16, %s982_s4, [#allocation4]  }
 0x3d3   :  { %772 = dma.done.wait [#allocation4], 16  }
 0x3d4   :  { %773 = vsyncadd [#allocation4], 4294967280 }
 0x3d5   :  { %549 = vsyncpa [#allocation3], 1 }
 0x3d6   :  { %550 = vsyncpa [#allocation8], 1 }
 0x3d7   :  { %551 = vsyncpa [#allocation4], 1 }
 0x3d8   :  { %552 = vsyncpa [#allocation5], 1 }

</bundles_post_ra>
